<compile_context>
chip_gen: v6e
topology: v6e:2x2x1
jax: 0.10.0
libtpu: 0.0.40
codegen_flags: <defaults>
</compile_context>

<pallas_src>
import functools

import jax
import jax.numpy as jnp
from jax.experimental import pallas as pl
from jax.experimental.pallas import tpu as pltpu


_LANE = 128


def _round_up(a: int, m: int) -> int:
    return ((a + m - 1) // m) * m


def _qnet_kernel(x_ref, w1_ref, b1_ref, w2_ref, b2_ref, w3_ref, b3_ref, o_ref):
    # fc1 (bf16 MXU inputs, f32 accumulation) + bias + ReLU in f32
    h1 = jnp.dot(x_ref[...], w1_ref[...], preferred_element_type=jnp.float32)
    h1 = jnp.maximum(h1 + b1_ref[...], 0.0)
    # fc2
    h2 = jnp.dot(h1.astype(w2_ref.dtype), w2_ref[...],
                 preferred_element_type=jnp.float32)
    h2 = jnp.maximum(h2 + b2_ref[...], 0.0)
    # out (no activation); output block is lane-dense (padded to 128 cols)
    out = jnp.dot(h2.astype(w3_ref.dtype), w3_ref[...],
                  preferred_element_type=jnp.float32)
    o_ref[...] = (out + b3_ref[...]).astype(o_ref.dtype)


@functools.partial(jax.jit, static_argnames=("block_m",))
def qnetwork_forward(x, w1, b1, w2, b2, w3, b3, *, block_m=256):
    """Pallas forward pass of QNetwork.

    x:  [B, state_dim]
    w1: [state_dim, H1], b1: [1, H1]
    w2: [H1, H2],        b2: [1, H2]
    w3: [H2, action_dim], b3: [1, action_dim]
    Returns [B, action_dim] in x.dtype.
    """
    B, state_dim = x.shape
    h1 = w1.shape[1]
    h2 = w2.shape[1]
    action_dim = w3.shape[1]
    out_dtype = x.dtype

    # ---- lane-dense output: pad action_dim up to a multiple of 128 ----
    n_out = _round_up(max(action_dim, _LANE), _LANE)
    if n_out != action_dim:
        w3 = jnp.pad(w3, ((0, 0), (0, n_out - action_dim)))
        b3 = jnp.pad(b3, ((0, 0), (0, n_out - action_dim)))

    # ---- bf16 MXU inputs, f32 biases/epilogue ----
    bf16 = jnp.bfloat16
    x_c = x.astype(bf16)
    w1c, w2c, w3c = w1.astype(bf16), w2.astype(bf16), w3.astype(bf16)
    b1c, b2c, b3c = (b1.astype(jnp.float32), b2.astype(jnp.float32),
                     b3.astype(jnp.float32))

    # ---- batch tiling (pad B up to a multiple of the tile) ----
    tm = min(block_m, _round_up(B, 8))          # small batches -> small tile
    num_tiles = pl.cdiv(B, tm)
    b_pad = num_tiles * tm
    if b_pad != B:
        x_c = jnp.pad(x_c, ((0, b_pad - B), (0, 0)))

    x_spec = pl.BlockSpec((tm, state_dim), lambda i: (i, 0))
    out_spec = pl.BlockSpec((tm, n_out), lambda i: (i, 0))
    # Constant block index -> weights/biases DMA'd once, VMEM-resident.
    w1_spec = pl.BlockSpec((state_dim, h1), lambda i: (0, 0))
    b1_spec = pl.BlockSpec((1, h1), lambda i: (0, 0))
    w2_spec = pl.BlockSpec((h1, h2), lambda i: (0, 0))
    b2_spec = pl.BlockSpec((1, h2), lambda i: (0, 0))
    w3_spec = pl.BlockSpec((h2, n_out), lambda i: (0, 0))
    b3_spec = pl.BlockSpec((1, n_out), lambda i: (0, 0))

    out_padded = pl.pallas_call(
        _qnet_kernel,
        out_shape=jax.ShapeDtypeStruct((b_pad, n_out), out_dtype),
        grid_spec=pl.GridSpec(
            grid=(num_tiles,),
            in_specs=[x_spec, w1_spec, b1_spec, w2_spec, b2_spec,
                      w3_spec, b3_spec],
            out_specs=out_spec,
        ),
        compiler_params=pltpu.CompilerParams(
            dimension_semantics=("parallel",),
        ),
    )(x_c, w1c, b1c, w2c, b2c, w3c, b3c)

    return out_padded[:B, :action_dim]


def init_qnetwork_params(key, state_dim, action_dim, hidden_sizes=(128, 128)):
    """PyTorch-nn.Linear-style init (U(-1/sqrt(fan_in), +)), weights as [in, out]."""
    h1, h2 = hidden_sizes
    keys = jax.random.split(key, 6)

    def linear(kw, kb, fan_in, fan_out):
        bound = 1.0 / jnp.sqrt(jnp.float32(fan_in))
        w = jax.random.uniform(kw, (fan_in, fan_out), jnp.float32, -bound, bound)
        b = jax.random.uniform(kb, (1, fan_out), jnp.float32, -bound, bound)
        return w, b

    w1, b1 = linear(keys[0], keys[1], state_dim, h1)
    w2, b2 = linear(keys[2], keys[3], h1, h2)
    w3, b3 = linear(keys[4], keys[5], h2, action_dim)
    return w1, b1, w2, b2, w3, b3


if __name__ == "__main__":
    key = jax.random.PRNGKey(0)
    k_x, k_p = jax.random.split(key)

    batch = 8
    state_dim = 16
    action_dim = 8
    hidden_sizes = (128, 128)

    x = jax.random.normal(k_x, (batch, state_dim), dtype=jnp.float32)
    params = init_qnetwork_params(k_p, state_dim, action_dim, hidden_sizes)

    q_values = qnetwork_forward(x, *params)
    q_values = jax.block_until_ready(q_values)
    assert q_values.shape == (batch, action_dim)

    # Pure-JAX reference mirroring the kernel's numerics (bf16 MXU inputs,
    # f32 accumulation / epilogue).
    w1, b1, w2, b2, w3, b3 = params
    bf16 = jnp.bfloat16
    r1 = jnp.maximum(
        jnp.dot(x.astype(bf16), w1.astype(bf16),
                preferred_element_type=jnp.float32) + b1, 0.0)
    r2 = jnp.maximum(
        jnp.dot(r1.astype(bf16), w2.astype(bf16),
                preferred_element_type=jnp.float32) + b2, 0.0)
    ref = jnp.dot(r2.astype(bf16), w3.astype(bf16),
                  preferred_element_type=jnp.float32) + b3

    assert jnp.allclose(q_values, ref, atol=1e-2, rtol=1e-2), (
        float(jnp.max(jnp.abs(q_values - ref))))

    print("KERNEL_OK")
</pallas_src>

<mosaic_0001>
module attributes {stable_mosaic.version = 11 : i64} {
  func.func @_qnet_kernel(%arg0: i32, %arg1: memref<8x16xbf16, #tpu.memory_space<vmem>>, %arg2: memref<16x128xbf16, #tpu.memory_space<vmem>>, %arg3: memref<1x128xf32, #tpu.memory_space<vmem>>, %arg4: memref<128x128xbf16, #tpu.memory_space<vmem>>, %arg5: memref<1x128xf32, #tpu.memory_space<vmem>>, %arg6: memref<128x128xbf16, #tpu.memory_space<vmem>>, %arg7: memref<1x128xf32, #tpu.memory_space<vmem>>, %arg8: memref<8x128xf32, #tpu.memory_space<vmem>>) attributes {dimension_semantics = [#tpu.dimension_semantics<parallel>], iteration_bounds = array<i64: 1>, scalar_prefetch = 0 : i64, scratch_operands = 0 : i64, tpu.core_type = #tpu.core_type<tc>, window_params = [{transform_indices = @transform_0, window_bounds = array<i64: 8, 16>}, {pipeline_mode = #tpu.pipeline_mode<synchronous>, transform_indices = @transform_1, window_bounds = array<i64: 16, 128>}, {pipeline_mode = #tpu.pipeline_mode<synchronous>, transform_indices = @transform_2, window_bounds = array<i64: 1, 128>}, {pipeline_mode = #tpu.pipeline_mode<synchronous>, transform_indices = @transform_3, window_bounds = array<i64: 128, 128>}, {pipeline_mode = #tpu.pipeline_mode<synchronous>, transform_indices = @transform_4, window_bounds = array<i64: 1, 128>}, {pipeline_mode = #tpu.pipeline_mode<synchronous>, transform_indices = @transform_5, window_bounds = array<i64: 128, 128>}, {pipeline_mode = #tpu.pipeline_mode<synchronous>, transform_indices = @transform_6, window_bounds = array<i64: 1, 128>}, {transform_indices = @transform_7, window_bounds = array<i64: 8, 128>}]} {
    %c0 = arith.constant 0 : index
    %c0_0 = arith.constant 0 : index
    %0 = vector.load %arg1[%c0, %c0_0] : memref<8x16xbf16, #tpu.memory_space<vmem>>, vector<8x16xbf16>
    %c0_1 = arith.constant 0 : index
    %c0_2 = arith.constant 0 : index
    %1 = vector.load %arg2[%c0_1, %c0_2] : memref<16x128xbf16, #tpu.memory_space<vmem>>, vector<16x128xbf16>
    %cst = arith.constant dense<0.000000e+00> : vector<8x128xf32>
    %2 = tpu.matmul %0, %1, %cst {dimension_numbers = #tpu.dot_dimension_numbers<[1], [0], [0], [1], [0, 0, 1, 1], [], []>} : vector<8x16xbf16>, vector<16x128xbf16>, vector<8x128xf32> -> vector<8x128xf32>
    %c0_3 = arith.constant 0 : index
    %c0_4 = arith.constant 0 : index
    %3 = vector.load %arg3[%c0_3, %c0_4] : memref<1x128xf32, #tpu.memory_space<vmem>>, vector<1x128xf32>
    %4 = vector.broadcast %3 : vector<1x128xf32> to vector<8x128xf32>
    %5 = arith.addf %2, %4 : vector<8x128xf32>
    %cst_5 = arith.constant 0.000000e+00 : f32
    %6 = vector.broadcast %cst_5 : f32 to vector<8x128xf32>
    %7 = arith.maximumf %5, %6 : vector<8x128xf32>
    %8 = arith.truncf %7 : vector<8x128xf32> to vector<8x128xbf16>
    %c0_6 = arith.constant 0 : index
    %c0_7 = arith.constant 0 : index
    %9 = vector.load %arg4[%c0_6, %c0_7] : memref<128x128xbf16, #tpu.memory_space<vmem>>, vector<128x128xbf16>
    %cst_8 = arith.constant dense<0.000000e+00> : vector<8x128xf32>
    %10 = tpu.matmul %8, %9, %cst_8 {dimension_numbers = #tpu.dot_dimension_numbers<[1], [0], [0], [1], [0, 0, 1, 1], [], []>} : vector<8x128xbf16>, vector<128x128xbf16>, vector<8x128xf32> -> vector<8x128xf32>
    %c0_9 = arith.constant 0 : index
    %c0_10 = arith.constant 0 : index
    %11 = vector.load %arg5[%c0_9, %c0_10] : memref<1x128xf32, #tpu.memory_space<vmem>>, vector<1x128xf32>
    %12 = vector.broadcast %11 : vector<1x128xf32> to vector<8x128xf32>
    %13 = arith.addf %10, %12 : vector<8x128xf32>
    %cst_11 = arith.constant 0.000000e+00 : f32
    %14 = vector.broadcast %cst_11 : f32 to vector<8x128xf32>
    %15 = arith.maximumf %13, %14 : vector<8x128xf32>
    %16 = arith.truncf %15 : vector<8x128xf32> to vector<8x128xbf16>
    %c0_12 = arith.constant 0 : index
    %c0_13 = arith.constant 0 : index
    %17 = vector.load %arg6[%c0_12, %c0_13] : memref<128x128xbf16, #tpu.memory_space<vmem>>, vector<128x128xbf16>
    %cst_14 = arith.constant dense<0.000000e+00> : vector<8x128xf32>
    %18 = tpu.matmul %16, %17, %cst_14 {dimension_numbers = #tpu.dot_dimension_numbers<[1], [0], [0], [1], [0, 0, 1, 1], [], []>} : vector<8x128xbf16>, vector<128x128xbf16>, vector<8x128xf32> -> vector<8x128xf32>
    %c0_15 = arith.constant 0 : index
    %c0_16 = arith.constant 0 : index
    %19 = vector.load %arg7[%c0_15, %c0_16] : memref<1x128xf32, #tpu.memory_space<vmem>>, vector<1x128xf32>
    %20 = vector.broadcast %19 : vector<1x128xf32> to vector<8x128xf32>
    %21 = arith.addf %18, %20 : vector<8x128xf32>
    %c0_17 = arith.constant 0 : index
    %c0_18 = arith.constant 0 : index
    %22 = vector.load %arg8[%c0_17, %c0_18] : memref<8x128xf32, #tpu.memory_space<vmem>>, vector<8x128xf32>
    tpu.vector_store %arg8[%c0_17, %c0_18], %21 {strides = array<i32>} : memref<8x128xf32, #tpu.memory_space<vmem>>, vector<8x128xf32>,
    return
  }
  func.func @transform_0(%arg0: i32) -> (i32, i32) {
    %c0_i32 = arith.constant 0 : i32
    %c0_i32_0 = arith.constant 0 : i32
    return %arg0, %c0_i32 : i32, i32
  }
  func.func @transform_1(%arg0: i32) -> (i32, i32) {
    %c0_i32 = arith.constant 0 : i32
    %c0_i32_0 = arith.constant 0 : i32
    %c0_i32_1 = arith.constant 0 : i32
    return %c0_i32, %c0_i32_0 : i32, i32
  }
  func.func @transform_2(%arg0: i32) -> (i32, i32) {
    %c0_i32 = arith.constant 0 : i32
    %c0_i32_0 = arith.constant 0 : i32
    %c0_i32_1 = arith.constant 0 : i32
    return %c0_i32, %c0_i32_0 : i32, i32
  }
  func.func @transform_3(%arg0: i32) -> (i32, i32) {
    %c0_i32 = arith.constant 0 : i32
    %c0_i32_0 = arith.constant 0 : i32
    %c0_i32_1 = arith.constant 0 : i32
    return %c0_i32, %c0_i32_0 : i32, i32
  }
  func.func @transform_4(%arg0: i32) -> (i32, i32) {
    %c0_i32 = arith.constant 0 : i32
    %c0_i32_0 = arith.constant 0 : i32
    %c0_i32_1 = arith.constant 0 : i32
    return %c0_i32, %c0_i32_0 : i32, i32
  }
  func.func @transform_5(%arg0: i32) -> (i32, i32) {
    %c0_i32 = arith.constant 0 : i32
    %c0_i32_0 = arith.constant 0 : i32
    %c0_i32_1 = arith.constant 0 : i32
    return %c0_i32, %c0_i32_0 : i32, i32
  }
  func.func @transform_6(%arg0: i32) -> (i32, i32) {
    %c0_i32 = arith.constant 0 : i32
    %c0_i32_0 = arith.constant 0 : i32
    %c0_i32_1 = arith.constant 0 : i32
    return %c0_i32, %c0_i32_0 : i32, i32
  }
  func.func @transform_7(%arg0: i32) -> (i32, i32) {
    %c0_i32 = arith.constant 0 : i32
    %c0_i32_0 = arith.constant 0 : i32
    return %arg0, %c0_i32 : i32, i32
  }
}

</mosaic_0001>

<bundles_post_ra>
// kernel: qnetwork_forward.1
= control target key start
LH: loop header
LB: loop body
LE: loop exit
PB: predicated region body
PF: predicated region fallthrough
CT: control target
= control target key end

     0   :  { %v458_v1 = vmov 0.0   ;;  %vm459_vm0 = vmmov 0   ;;  %vm44_vm1 = vcmask 130048   ;;  %s587_s0 = inlined_call_operand.vmem [shape: bf16[8,16], index: 0, kind: input, shape index: {}]   ;;  %s588_s1 = inlined_call_operand.vmem [shape: bf16[16,128], index: 1, kind: input, shape index: {}]   ;;  %s589_s2 = inlined_call_operand.vmem [shape: f32[1,128], index: 2, kind: input, shape index: {}]   ;;  %s590_s3 = inlined_call_operand.vmem [shape: bf16[128,128], index: 3, kind: input, shape index: {}]   ;;  %s591_s4 = inlined_call_operand.vmem [shape: f32[1,128], index: 4, kind: input, shape index: {}]   ;;  %s592_s5 = inlined_call_operand.vmem [shape: bf16[128,128], index: 5, kind: input, shape index: {}]   ;;  %s593_s6 = inlined_call_operand.vmem [shape: f32[1,128], index: 6, kind: input, shape index: {}]   ;;  %s594_s7 = inlined_call_operand.hbm [shape: f32[8,128], index: 7, kind: output, shape index: {}]  }
   0x1   :  { %v419_v0 = vld [vmem:[%s588_s1] sm:$0xff]   ;;  %370 = vmatprep.subr.bf16.mxu0 %v458_v1  ;;  %376 = vmatprep.subr.bf16.mxu1 %v458_v1  ;;  %v420_v3 = vld [vmem:[%s590_s3 + $0x38] sm:$0xff]   ;;  %v421_v4 = vld [vmem:[%s590_s3 + $0x30] sm:$0xff]  }
   0x2   :  { %v28_v2 = vld [vmem:[%s587_s0] sm:$0xf]  ;;  %371 = vmatpush3.bf16.msra.mxu0 %v419_v0  ;;  %372 = vmatprep.mubr.msk.bf16.mxu0 %vm459_vm0, %v458_v1  ;;  %v422_v5 = vld [vmem:[%s590_s3 + $0x28] sm:$0xff]  }
   0x3   :  { %392 = vmatprep.mubr.msk.bf16.mxu1 %vm459_vm0, %v458_v1  ;;  %396 = vmatprep.subr.bf16.mxu0 %v458_v1  ;;  %v423_v6 = vld [vmem:[%s590_s3 + $0x20] sm:$0xff]  }
   0x4   :  { %377 = vmatpush3.bf16.msra.mxu1 %v420_v3 }
   0x5   :  { %373 = vmatmul.mubr.msk.bf16.vlgmr.msra.gmra.mxu0 %vm44_vm1, %v28_v2  ;;  %378 = vmatprep.subr.bf16.mxu1 %v458_v1 }
   0x6   :  { %412 = vmatprep.mubr.msk.bf16.mxu0 %vm459_vm0, %v458_v1 }
   0x8   :  { %379 = vmatpush3.bf16.msra.mxu1 %v421_v4 }
   0x9   :  { %380 = vmatprep.subr.bf16.mxu1 %v458_v1 }
   0xc   :  { %381 = vmatpush3.bf16.msra.mxu1 %v422_v5 }
   0xd   :  { %382 = vmatprep.subr.bf16.mxu1 %v458_v1 }
   0xe   :  { %12 = vsyncpa [#allocation3], 0  ;;  %v424_v7 = vld [vmem:[%s590_s3 + $0x18] sm:$0xff]   ;;  %v425_v8 = vld [vmem:[%s590_s3 + $0x10] sm:$0xff]   ;;  %s460_s14 = smov [#allocation2]  }
   0xf   :  { %v426_v9 = vld [vmem:[%s590_s3 + $0x8] sm:$0xff]   ;;  %v427_v10 = vld [vmem:[%s590_s3] sm:$0xff]   ;;  %v428_v11 = vld [vmem:[%s592_s5 + $0x38] sm:$0xff]   ;;  %s321_s15 = sshll.u32 %s460_s14, 4  ;;  %s322_s15 = int_to_ptr.vmem [resolvable:$true] %s321_s15 }
  0x10   :  { %383 = vmatpush3.bf16.msra.mxu1 %v423_v6  ;;  %397 = vmatpush3.bf16.msra.mxu0 %v428_v11  ;;  %v429_v12 = vld [vmem:[%s592_s5 + $0x30] sm:$0xff]   ;;  %v430_v13 = vld [vmem:[%s592_s5 + $0x28] sm:$0xff]   ;;  %v431_v14 = vld [vmem:[%s592_s5 + $0x20] sm:$0xff]   ;;  %p441_p1 = scmp.lt.s32.totalorder %s322_s15, %s322_s15 }
  0x11   :  { %384 = vmatprep.subr.bf16.mxu1 %v458_v1  ;;  %398 = vmatprep.subr.bf16.mxu0 %v458_v1  ;;  %v432_v15 = vld [vmem:[%s592_s5 + $0x18] sm:$0xff]   ;;  %v433_v16 = vld [vmem:[%s592_s5 + $0x10] sm:$0xff]   ;;  %v329_v17 = vld [vmem:[%s589_s2] ss:$0 sm:$0xff] }
  0x12   :  { %v434_v25 = vld [vmem:[%s592_s5 + $0x8] sm:$0xff]   ;;  %v435_v26 = vld [vmem:[%s592_s5] sm:$0xff]  }
  0x13   :  { %v332_v27 = vld [vmem:[%s591_s4] ss:$0 sm:$0xff]  ;;  %s436_s4 = scalar_lea.vmem %s322_s15, 128 }
  0x14   :  { %385 = vmatpush3.bf16.msra.mxu1 %v424_v7  ;;  %399 = vmatpush3.bf16.msra.mxu0 %v429_v12  ;;  %v341_v35 = vld [vmem:[%s593_s6] ss:$0 sm:$0xff]  ;;  %p437_p0 = scmp.ne.s32.totalorder %s322_s15, %s436_s4  ;;  %p442_p2 = scmp.lt.s32.totalorder %s436_s4, %s436_s4 }
  0x15   :  { %386 = vmatprep.subr.bf16.mxu1 %v458_v1  ;;  %400 = vmatprep.subr.bf16.mxu0 %v458_v1 }
  0x16   :  { %p443_p3 = por %p442_p2, %p441_p1 }
  0x18   :  { %387 = vmatpush3.bf16.msra.mxu1 %v425_v8  ;;  %401 = vmatpush3.bf16.msra.mxu0 %v430_v13  ;;  %p444_p4 = pnand %p443_p3, %p437_p0 }
  0x19   :  { %388 = vmatprep.subr.bf16.mxu1 %v458_v1  ;;  %402 = vmatprep.subr.bf16.mxu0 %v458_v1 }
  0x1c   :  { %389 = vmatpush3.bf16.msra.mxu1 %v426_v9  ;;  %403 = vmatpush3.bf16.msra.mxu0 %v431_v14 }
  0x1d   :  { %390 = vmatprep.subr.bf16.mxu1 %v458_v1  ;;  %404 = vmatprep.subr.bf16.mxu0 %v458_v1 }
  0x20   :  { %391 = vmatpush3.bf16.msra.mxu1 %v427_v10  ;;  %405 = vmatpush3.bf16.msra.mxu0 %v432_v15 }
  0x21   :  { %406 = vmatprep.subr.bf16.mxu0 %v458_v1 }
  0x24   :  { %407 = vmatpush3.bf16.msra.mxu0 %v433_v16 }
  0x25   :  { %408 = vmatprep.subr.bf16.mxu0 %v458_v1 }
  0x28   :  { %409 = vmatpush3.bf16.msra.mxu0 %v434_v25 }
  0x29   :  { %410 = vmatprep.subr.bf16.mxu0 %v458_v1 }
  0x2c   :  { %411 = vmatpush3.bf16.msra.mxu0 %v435_v26 }
  0xc5   :  { %v82_v18 = vpop.f32.mrf.mxu0 }
  0xc6   :  { %v83_v19 = vadd.f32 %v329_v17, %v82_v18 }
  0xc7   :  { %v374_v20 = vpop.f32.mrf.mxu0 }
  0xc8   :  { %v88_v21 = vmax.f32 %v83_v19, 0.0 }
  0xc9   :  { %v85_v22 = vpop.f32.mrf.mxu0 }
  0xca   :  { %v89_v23 = vpack.c.bf16 %v88_v21, %v88_v21 }
  0xcb   :  { %v375_v24 = vpop.f32.mrf.mxu0 }
  0xcc   :  { %393 = vmatmul.mubr.bf16.vlgmr.msra.gmra.mxu1 %v89_v23 }
 0x18c   :  { %v195_v28 = vpop.f32.mrf.mxu1 }
 0x18d   :  { %v196_v29 = vadd.f32 %v332_v27, %v195_v28 }
 0x18e   :  { %v394_v30 = vpop.f32.mrf.mxu1 }
 0x18f   :  { %v201_v31 = vmax.f32 %v196_v29, 0.0 }
 0x190   :  { %v198_v32 = vpop.f32.mrf.mxu1 }
 0x191   :  { %v202_v33 = vpack.c.bf16 %v201_v31, %v201_v31 }
 0x192   :  { %v395_v34 = vpop.f32.mrf.mxu1 }
 0x193   :  { %413 = vmatmul.mubr.bf16.vlgmr.msra.gmra.mxu0 %v202_v33 }
 0x253   :  { %v308_v36 = vpop.f32.mrf.mxu0 }
 0x254   :  { %v309_v37 = vadd.f32 %v341_v35, %v308_v36 }
 0x255   :  { %v414_v38 = vpop.f32.mrf.mxu0 }
 0x256   :  { %314 = vst [vmem:[#allocation2] sm:$0xff] %v309_v37 }
 0x257   :  { %v311_v39 = vpop.f32.mrf.mxu0 }
 0x258   :  { %447 = shalt.err (!%p444_p4)
}
 0x259   :  { %324 = dma.vmem_to_hbm [thread:$0]  %s322_s15, 128, %s594_s7, [#allocation3]   ;;  %v415_v40 = vpop.f32.mrf.mxu0 }
 0x25a   :  { %456 = dma.done.wait [#allocation3], 128  }
 0x25b   :  { %457 = vsyncadd [#allocation3], 4294967168 }
 0x25c   :  { %328 = vsyncpa [#allocation3], 1 }

</bundles_post_ra>
